<compile_context>
chip_gen: v6e
topology: v6e:2x2x1
jax: 0.10.0
libtpu: 0.0.40
codegen_flags: <defaults>
</compile_context>

<pallas_src>
import functools

import jax
import jax.numpy as jnp
from jax.experimental import pallas as pl
from jax.experimental.pallas import tpu as pltpu


# -----------------------------------------------------------------------------
# Plain-JAX glue: octave transforms + trilinear sampling of the noise cube.
# Mirrors `sample_trilinear` in the PyTorch reference exactly, including the
# trunc-style fmod followed by the flattened `% R**3` wrap (torch semantics).
# TODO(synk): fuse the 8-corner gather in-kernel (the noise cube is only ~32 KB,
# jnp.take on a VMEM ref) to drop the sampled-noise HBM round trip; kept in JAX
# because data-dependent gather lowering is the risky path.
# -----------------------------------------------------------------------------
def sample_trilinear_jax(noise, coords):
    """noise: [n_oct, R, R, R]; coords: [bs, n_oct, 3, P] -> [bs, n_oct, P]."""
    n_oct, R = noise.shape[:2]
    bs, _, _, P = coords.shape
    cx = coords[:, :, 0, :]
    cy = coords[:, :, 1, :]
    cz = coords[:, :, 2, :]
    x0 = jnp.floor(cx); x1 = x0 + 1.0
    y0 = jnp.floor(cy); y1 = y0 + 1.0
    z0 = jnp.floor(cz); z1 = z0 + 1.0
    w_x = cx - x0
    w_y = cy - y0
    w_z = cz - z0
    Rf = jnp.float32(R)
    fm = lambda a: jnp.fmod(a, Rf)            # torch.fmod semantics (trunc)
    x0, x1, y0, y1, z0, z1 = (fm(a) for a in (x0, x1, y0, y1, z0, z1))

    noise_flat = noise.reshape(n_oct, R ** 3)
    M = jnp.float32(R ** 3)

    def make_idx(a, b, c):
        # torch `%` == remainder (sign of divisor), then .long() truncation.
        return jnp.remainder(a * (R * R) + b * R + c, M).astype(jnp.int32)

    nf_b = jnp.broadcast_to(noise_flat[None], (bs, n_oct, R ** 3))

    def gather(idx):
        return jnp.take_along_axis(nf_b, idx, axis=2)

    v000 = gather(make_idx(x0, y0, z0))
    v001 = gather(make_idx(x0, y0, z1))
    v010 = gather(make_idx(x0, y1, z0))
    v011 = gather(make_idx(x0, y1, z1))
    v100 = gather(make_idx(x1, y0, z0))
    v101 = gather(make_idx(x1, y0, z1))
    v110 = gather(make_idx(x1, y1, z0))
    v111 = gather(make_idx(x1, y1, z1))

    c00 = v000 * (1.0 - w_z) + v001 * w_z
    c01 = v010 * (1.0 - w_z) + v011 * w_z
    c10 = v100 * (1.0 - w_z) + v101 * w_z
    c11 = v110 * (1.0 - w_z) + v111 * w_z
    c0 = c00 * (1.0 - w_y) + c01 * w_y
    c1 = c10 * (1.0 - w_y) + c11 * w_y
    c = c0 * (1.0 - w_x) + c1 * w_x
    return c  # [bs, n_oct, P]


def compute_sampled_noise(coords, noise_cube, transformations, n_octaves):
    """Octave transforms (Generator.trans) + trilinear sampling. -> [bs,n_oct,P] f32."""
    bs, _, P = coords.shape
    if n_octaves == 16:
        factors = 2.0 ** jnp.arange(n_octaves, dtype=jnp.float32)
    else:
        factors = 2.0 ** (jnp.arange(n_octaves, dtype=jnp.float32) / 2.0)
    oct_factors = jnp.eye(3, dtype=jnp.float32)[None] * factors[:, None, None]
    trans_b = jnp.broadcast_to(transformations, (bs, n_octaves, 3, 3))
    octave_trans = jnp.matmul(trans_b, oct_factors[None])          # [bs,n_oct,3,3]
    coords_rep = jnp.broadcast_to(coords[:, None], (bs, n_octaves, 3, P))
    octave_coords = jnp.matmul(octave_trans, coords_rep)           # [bs,n_oct,3,P]
    return sample_trilinear_jax(noise_cube, octave_coords)         # [bs,n_oct,P]


# -----------------------------------------------------------------------------
# Pallas kernel: the 5 remaining pointwise-conv layers with fused noise + bias.
# -----------------------------------------------------------------------------
def generator_mlp_kernel(noise_ref, convw_ref, noisew_ref, w5_ref, b4_ref,
                         b5_ref, out_ref, *, hidden_dim, neg_slope=0.2):
    C = hidden_dim
    noise = noise_ref[0]            # [n_oct+1, tile_p] bf16 (octaves + ones row)
    noisew = noisew_ref[...]        # [4C, n_oct+1] bf16 (block-diag octaves + bias col)
    w5 = w5_ref[...]                # [8, C] bf16 (rgb head padded to 8 rows)
    b4 = b4_ref[...]                # [C, 1] f32 (conv4 bias)
    b5 = b5_ref[...]                # [8, 1] f32 (padded conv5 bias)

    def lrelu_bf16(t_f32):
        # max(t, 0.2*t) in bf16: 2 VPU ops, result feeds the next MXU matmul.
        tb = t_f32.astype(jnp.bfloat16)
        return jnp.maximum(tb, tb * neg_slope)

    # One batched MXU matmul covers all 4 layers' per-octave noise injection AND
    # their biases (ones row in `noise`, bias column in `noisew`).  128 rows
    # fill the MXU instead of 4x 32-row matmuls.
    noise_all = jnp.dot(noisew, noise,
                        preferred_element_type=jnp.float32)        # [4C, tile_p]

    # Layer 0: conv0(ones base) + bias0 are folded host-side into the bias col.
    x = lrelu_bf16(noise_all[0:C])

    # Layers 1..3: conv (bf16 MXU, f32 acc) + fused noise/bias -> LeakyReLU.
    for l in range(1, 4):
        t = jnp.dot(convw_ref[l - 1], x, preferred_element_type=jnp.float32)
        x = lrelu_bf16(t + noise_all[l * C:(l + 1) * C])

    # Layer 4: conv4 + bias -> LeakyReLU.
    t = jnp.dot(convw_ref[3], x, preferred_element_type=jnp.float32) + b4
    x = lrelu_bf16(t)

    # Layer 5: rgb head (padded to 8 sublanes for an unmasked, aligned store).
    out_ref[0] = jnp.dot(w5, x, preferred_element_type=jnp.float32) + b5


def _round_up(x, m):
    return ((x + m - 1) // m) * m


def _choose_tile_p(P, bs, max_tile=8192):
    """Lane-aligned pixel tile; P is zero-padded up to a multiple of it.

    max_tile=8192 keeps per-step VMEM ~8-9 MiB (noise_all [4C,tile] f32 ~4 MiB
    plus double-buffered I/O), well under the 32 MiB scoped default on all of
    v5e/v6e/v7x, while amortizing the ~0.35us per-grid-step overhead.
    """
    tile = min(max_tile, _round_up(P, 128))
    # Keep >= 2 grid steps so both v7x TensorCores get work under "parallel".
    if bs * ((P + tile - 1) // tile) < 2 and tile > 128:
        tile = max(128, _round_up((P + 1) // 2, 128))
    return tile


def _prepare_kernel_params(params, C, n_octaves):
    """Host-side parameter prep (runs once per jit trace; trivial cost)."""
    opl = n_octaves // 4
    n_aug = n_octaves + 1                       # + ones row for the bias column
    convw = params["convw"]                     # [5, C, C] f32
    nw = params["noisew"]                       # [4, opl, C] f32
    bvec = params["bvec"]                       # [5, C] f32 (bias0..bias3, conv4 bias)
    w5 = params["w5"]                           # [3, C] f32
    b5 = params["b5"]                           # [3] f32

    # Fold conv0 applied to the constant `ones` base into bias0.  Use the
    # bf16-rounded conv0 weights so the fold matches MXU operand precision.
    conv0_bf = convw[0].astype(jnp.bfloat16).astype(jnp.float32)
    b0_fold = bvec[0] + conv0_bf.sum(axis=1)
    bias03 = jnp.stack([b0_fold, bvec[1], bvec[2], bvec[3]], axis=0)  # [4, C]

    # Batched noise-injection weight: block-diagonal over the 4 octave groups,
    # with the per-layer bias in the last column (multiplied by the ones row).
    big = jnp.zeros((4, C, n_aug), jnp.float32)
    for l in range(4):
        big = big.at[l, :, l * opl:(l + 1) * opl].set(nw[l].T)
    big = big.at[:, :, n_octaves].set(bias03)
    noisew_big = big.reshape(4 * C, n_aug).astype(jnp.bfloat16)

    # Pad the rgb head from 3 to 8 output channels (aligned final store).
    w5p = jnp.zeros((8, C), jnp.float32).at[:3].set(w5).astype(jnp.bfloat16)
    b5p = jnp.zeros((8,), jnp.float32).at[:3].set(b5)[:, None]

    return (convw[1:5].astype(jnp.bfloat16),            # conv1..conv4
            noisew_big,
            w5p,
            bvec[4][:, None].astype(jnp.float32),       # conv4 bias
            b5p.astype(jnp.float32))


def generator_forward(coords, noise_cube, params, *, img_h, img_w,
                      n_octaves, hidden_dim):
    """coords: [bs, 3, img_h*img_w]; noise_cube: [n_oct, R, R, R] -> rgb [bs,3,H,W]."""
    bs = coords.shape[0]
    P = img_h * img_w
    C = hidden_dim
    assert coords.shape == (bs, 3, P)
    n_aug = n_octaves + 1

    # Octave transforms + trilinear sampling (plain JAX; see TODO(synk) above).
    sampled = compute_sampled_noise(coords, noise_cube,
                                    params["transformations"], n_octaves)

    # bf16 noise hand-off + ones row (for the fused bias column); no f32 copy
    # of `sampled` is written to HBM since it is not returned.
    noise_in = jnp.concatenate(
        [sampled.astype(jnp.bfloat16),
         jnp.ones((bs, 1, P), jnp.bfloat16)], axis=1)      # [bs, n_oct+1, P]

    tile_p = _choose_tile_p(P, bs)
    P_pad = _round_up(P, tile_p)
    if P_pad != P:
        noise_in = jnp.pad(noise_in, ((0, 0), (0, 0), (0, P_pad - P)))

    convw_k, noisew_k, w5_k, b4_k, b5_k = _prepare_kernel_params(params, C,
                                                                 n_octaves)

    grid = (bs, P_pad // tile_p)
    kernel = functools.partial(generator_mlp_kernel, hidden_dim=C)

    rgb8 = pl.pallas_call(
        kernel,
        out_shape=jax.ShapeDtypeStruct((bs, 8, P_pad), jnp.float32),
        grid_spec=pltpu.PrefetchScalarGridSpec(
            num_scalar_prefetch=0,
            grid=grid,
            in_specs=[
                pl.BlockSpec((1, n_aug, tile_p), lambda b, p: (b, 0, p)),
                pl.BlockSpec((4, C, C), lambda b, p: (0, 0, 0)),
                pl.BlockSpec((4 * C, n_aug), lambda b, p: (0, 0)),
                pl.BlockSpec((8, C), lambda b, p: (0, 0)),
                pl.BlockSpec((C, 1), lambda b, p: (0, 0)),
                pl.BlockSpec((8, 1), lambda b, p: (0, 0)),
            ],
            out_specs=pl.BlockSpec((1, 8, tile_p), lambda b, p: (b, 0, p)),
        ),
        compiler_params=pltpu.CompilerParams(
            dimension_semantics=("parallel", "parallel")),
    )(noise_in, convw_k, noisew_k, w5_k, b4_k, b5_k)

    rgb = rgb8[:, :3, :P].reshape(bs, 3, img_h, img_w)
    return rgb


# -----------------------------------------------------------------------------
# Reference MLP stack for the correctness sanity check.  Follows the original
# PyTorch structure (conv0 on the ones base, per-octave noise loop, bias adds,
# LeakyReLU) but mirrors the kernel's precision choices: bf16 dot operands with
# f32 accumulation and bf16 elementwise LeakyReLU.
# -----------------------------------------------------------------------------
def mlp_reference(sampled, params, hidden_dim, oct_per_layer):
    bs, n_oct, P = sampled.shape
    C = hidden_dim
    convw, w5 = params["convw"], params["w5"]
    noisew, bvec, b5 = params["noisew"], params["bvec"], params["b5"]

    def lrelu(t):  # mirrors kernel: bf16 elementwise, max-form LeakyReLU
        tb = t.astype(jnp.bfloat16)
        return jnp.maximum(tb, tb * 0.2).astype(jnp.float32)

    def conv(w, x):  # bf16 operands, f32 accumulation — mirrors the MXU path.
        return jnp.einsum("oc,bcp->bop", w.astype(jnp.bfloat16),
                          x.astype(jnp.bfloat16),
                          preferred_element_type=jnp.float32)

    s = sampled.astype(jnp.bfloat16).astype(jnp.float32)   # kernel gets bf16 noise
    nw = noisew.astype(jnp.bfloat16).astype(jnp.float32)

    x = jnp.ones((bs, C, P), jnp.float32)
    for layer in range(4):
        t = conv(convw[layer], x)
        for i in range(oct_per_layer):
            oc = layer * oct_per_layer + i
            t = t + s[:, oc][:, None, :] * nw[layer, i][None, :, None]
        t = t + bvec[layer][None, :, None]
        x = lrelu(t)
    t = conv(convw[4], x) + bvec[4][None, :, None]
    x = lrelu(t)
    return conv(w5, x) + b5[None, :, None]


if __name__ == "__main__":
    # Small test shapes consistent with the module's forward.
    bs = 2
    hidden_dim = 32
    n_octaves = 16
    img_h = img_w = 16
    noise_res = 8
    P = img_h * img_w

    key = jax.random.PRNGKey(0)
    keys = jax.random.split(key, 12)

    # Deterministic synthetic parameters (shapes per Generator.__init__).
    params = {
        # nn.Parameter(torch.randn(n_octaves, 3, 3).unsqueeze(0))
        "transformations": jax.random.normal(keys[0], (1, n_octaves, 3, 3),
                                             jnp.float32),
        # conv0..conv4 weights, stacked: [5, C, C] (1x1 convs == matmuls)
        "convw": jax.random.normal(keys[1], (5, hidden_dim, hidden_dim),
                                   jnp.float32) / jnp.sqrt(hidden_dim),
        # conv5 weight: [3, C]
        "w5": jax.random.normal(keys[2], (3, hidden_dim),
                                jnp.float32) / jnp.sqrt(hidden_dim),
        # per-octave noise weights for the 4 add_noise layers: [4, opl, C]
        "noisew": 0.1 * jax.random.normal(
            keys[3], (4, n_octaves // 4, hidden_dim), jnp.float32),
        # bias0..bias3 + conv4 bias, stacked: [5, C]
        "bvec": 0.1 * jax.random.normal(keys[4], (5, hidden_dim), jnp.float32),
        # conv5 bias: [3]
        "b5": 0.1 * jax.random.normal(keys[5], (3,), jnp.float32),
    }

    # Inputs (coords span negatives to exercise the fmod/wrap path).
    coords = jax.random.uniform(keys[6], (bs, 3, P), jnp.float32,
                                minval=-2.0, maxval=2.0)
    noise_cube = jax.random.normal(
        keys[7], (n_octaves, noise_res, noise_res, noise_res), jnp.float32)

    fwd = jax.jit(functools.partial(generator_forward, img_h=img_h, img_w=img_w,
                                    n_octaves=n_octaves, hidden_dim=hidden_dim))
    rgb = fwd(coords, noise_cube, params)
    jax.block_until_ready(rgb)

    assert rgb.shape == (bs, 3, img_h, img_w)

    # Sanity check against a reference of the MLP stack (precision-mirrored).
    sampled_ref = compute_sampled_noise(coords, noise_cube,
                                        params["transformations"], n_octaves)
    ref = mlp_reference(sampled_ref, params, hidden_dim, n_octaves // 4)
    ref = ref.reshape(bs, 3, img_h, img_w)
    assert jnp.allclose(rgb, ref, rtol=2e-2, atol=2e-2), (
        float(jnp.max(jnp.abs(rgb - ref))))

    print("KERNEL_OK")
</pallas_src>

<mosaic_0001>
module attributes {stable_mosaic.version = 11 : i64} {
  func.func @generator_mlp_kernel(%arg0: i32, %arg1: i32, %arg2: memref<1x17x256xbf16, #tpu.memory_space<vmem>>, %arg3: memref<4x32x32xbf16, #tpu.memory_space<vmem>>, %arg4: memref<128x17xbf16, #tpu.memory_space<vmem>>, %arg5: memref<8x32xbf16, #tpu.memory_space<vmem>>, %arg6: memref<32x1xf32, #tpu.memory_space<vmem>>, %arg7: memref<8x1xf32, #tpu.memory_space<vmem>>, %arg8: memref<1x8x256xf32, #tpu.memory_space<vmem>>) attributes {dimension_semantics = [#tpu.dimension_semantics<parallel>, #tpu.dimension_semantics<parallel>], iteration_bounds = array<i64: 2, 1>, scalar_prefetch = 0 : i64, scratch_operands = 0 : i64, tpu.core_type = #tpu.core_type<tc>, window_params = [{transform_indices = @transform_0, window_bounds = array<i64: 1, 17, 256>}, {pipeline_mode = #tpu.pipeline_mode<synchronous>, transform_indices = @transform_1, window_bounds = array<i64: 4, 32, 32>}, {pipeline_mode = #tpu.pipeline_mode<synchronous>, transform_indices = @transform_2, window_bounds = array<i64: 128, 17>}, {pipeline_mode = #tpu.pipeline_mode<synchronous>, transform_indices = @transform_3, window_bounds = array<i64: 8, 32>}, {pipeline_mode = #tpu.pipeline_mode<synchronous>, transform_indices = @transform_4, window_bounds = array<i64: 32, 1>}, {pipeline_mode = #tpu.pipeline_mode<synchronous>, transform_indices = @transform_5, window_bounds = array<i64: 8, 1>}, {transform_indices = @transform_6, window_bounds = array<i64: 1, 8, 256>}]} {
    %c0 = arith.constant 0 : index
    %c0_0 = arith.constant 0 : index
    %c0_1 = arith.constant 0 : index
    %0 = vector.load %arg2[%c0, %c0_0, %c0_1] : memref<1x17x256xbf16, #tpu.memory_space<vmem>>, vector<1x17x256xbf16>
    %1 = vector.shape_cast %0 : vector<1x17x256xbf16> to vector<17x256xbf16>
    %c0_2 = arith.constant 0 : index
    %c0_3 = arith.constant 0 : index
    %2 = vector.load %arg4[%c0_2, %c0_3] : memref<128x17xbf16, #tpu.memory_space<vmem>>, vector<128x17xbf16>
    %c0_4 = arith.constant 0 : index
    %c0_5 = arith.constant 0 : index
    %3 = vector.load %arg5[%c0_4, %c0_5] : memref<8x32xbf16, #tpu.memory_space<vmem>>, vector<8x32xbf16>
    %c0_6 = arith.constant 0 : index
    %c0_7 = arith.constant 0 : index
    %4 = vector.load %arg6[%c0_6, %c0_7] : memref<32x1xf32, #tpu.memory_space<vmem>>, vector<32x1xf32>
    %c0_8 = arith.constant 0 : index
    %c0_9 = arith.constant 0 : index
    %5 = vector.load %arg7[%c0_8, %c0_9] : memref<8x1xf32, #tpu.memory_space<vmem>>, vector<8x1xf32>
    %cst = arith.constant dense<0.000000e+00> : vector<128x256xf32>
    %6 = tpu.matmul %2, %1, %cst {dimension_numbers = #tpu.dot_dimension_numbers<[1], [0], [0], [1], [0, 0, 1, 1], [], []>} : vector<128x17xbf16>, vector<17x256xbf16>, vector<128x256xf32> -> vector<128x256xf32>
    %7 = vector.extract_strided_slice %6 {offsets = [0, 0], sizes = [32, 256], strides = [1, 1]} : vector<128x256xf32> to vector<32x256xf32>
    %8 = arith.truncf %7 : vector<32x256xf32> to vector<32x256xbf16>
    %cst_10 = arith.constant 2.001950e-01 : bf16
    %9 = vector.broadcast %cst_10 : bf16 to vector<32x256xbf16>
    %10 = arith.mulf %8, %9 : vector<32x256xbf16>
    %11 = arith.maximumf %8, %10 : vector<32x256xbf16>
    %c0_11 = arith.constant 0 : index
    %c0_12 = arith.constant 0 : index
    %c0_13 = arith.constant 0 : index
    %12 = vector.load %arg3[%c0_11, %c0_12, %c0_13] : memref<4x32x32xbf16, #tpu.memory_space<vmem>>, vector<1x32x32xbf16>
    %13 = vector.shape_cast %12 : vector<1x32x32xbf16> to vector<32x32xbf16>
    %cst_14 = arith.constant dense<0.000000e+00> : vector<32x256xf32>
    %14 = tpu.matmul %13, %11, %cst_14 {dimension_numbers = #tpu.dot_dimension_numbers<[1], [0], [0], [1], [0, 0, 1, 1], [], []>} : vector<32x32xbf16>, vector<32x256xbf16>, vector<32x256xf32> -> vector<32x256xf32>
    %15 = vector.extract_strided_slice %6 {offsets = [32, 0], sizes = [32, 256], strides = [1, 1]} : vector<128x256xf32> to vector<32x256xf32>
    %16 = arith.addf %14, %15 : vector<32x256xf32>
    %17 = arith.truncf %16 : vector<32x256xf32> to vector<32x256xbf16>
    %cst_15 = arith.constant 2.001950e-01 : bf16
    %18 = vector.broadcast %cst_15 : bf16 to vector<32x256xbf16>
    %19 = arith.mulf %17, %18 : vector<32x256xbf16>
    %20 = arith.maximumf %17, %19 : vector<32x256xbf16>
    %c1 = arith.constant 1 : index
    %c0_16 = arith.constant 0 : index
    %c0_17 = arith.constant 0 : index
    %21 = vector.load %arg3[%c1, %c0_16, %c0_17] : memref<4x32x32xbf16, #tpu.memory_space<vmem>>, vector<1x32x32xbf16>
    %22 = vector.shape_cast %21 : vector<1x32x32xbf16> to vector<32x32xbf16>
    %cst_18 = arith.constant dense<0.000000e+00> : vector<32x256xf32>
    %23 = tpu.matmul %22, %20, %cst_18 {dimension_numbers = #tpu.dot_dimension_numbers<[1], [0], [0], [1], [0, 0, 1, 1], [], []>} : vector<32x32xbf16>, vector<32x256xbf16>, vector<32x256xf32> -> vector<32x256xf32>
    %24 = vector.extract_strided_slice %6 {offsets = [64, 0], sizes = [32, 256], strides = [1, 1]} : vector<128x256xf32> to vector<32x256xf32>
    %25 = arith.addf %23, %24 : vector<32x256xf32>
    %26 = arith.truncf %25 : vector<32x256xf32> to vector<32x256xbf16>
    %cst_19 = arith.constant 2.001950e-01 : bf16
    %27 = vector.broadcast %cst_19 : bf16 to vector<32x256xbf16>
    %28 = arith.mulf %26, %27 : vector<32x256xbf16>
    %29 = arith.maximumf %26, %28 : vector<32x256xbf16>
    %c2 = arith.constant 2 : index
    %c0_20 = arith.constant 0 : index
    %c0_21 = arith.constant 0 : index
    %30 = vector.load %arg3[%c2, %c0_20, %c0_21] : memref<4x32x32xbf16, #tpu.memory_space<vmem>>, vector<1x32x32xbf16>
    %31 = vector.shape_cast %30 : vector<1x32x32xbf16> to vector<32x32xbf16>
    %cst_22 = arith.constant dense<0.000000e+00> : vector<32x256xf32>
    %32 = tpu.matmul %31, %29, %cst_22 {dimension_numbers = #tpu.dot_dimension_numbers<[1], [0], [0], [1], [0, 0, 1, 1], [], []>} : vector<32x32xbf16>, vector<32x256xbf16>, vector<32x256xf32> -> vector<32x256xf32>
    %33 = vector.extract_strided_slice %6 {offsets = [96, 0], sizes = [32, 256], strides = [1, 1]} : vector<128x256xf32> to vector<32x256xf32>
    %34 = arith.addf %32, %33 : vector<32x256xf32>
    %35 = arith.truncf %34 : vector<32x256xf32> to vector<32x256xbf16>
    %cst_23 = arith.constant 2.001950e-01 : bf16
    %36 = vector.broadcast %cst_23 : bf16 to vector<32x256xbf16>
    %37 = arith.mulf %35, %36 : vector<32x256xbf16>
    %38 = arith.maximumf %35, %37 : vector<32x256xbf16>
    %c3 = arith.constant 3 : index
    %c0_24 = arith.constant 0 : index
    %c0_25 = arith.constant 0 : index
    %39 = vector.load %arg3[%c3, %c0_24, %c0_25] : memref<4x32x32xbf16, #tpu.memory_space<vmem>>, vector<1x32x32xbf16>
    %40 = vector.shape_cast %39 : vector<1x32x32xbf16> to vector<32x32xbf16>
    %cst_26 = arith.constant dense<0.000000e+00> : vector<32x256xf32>
    %41 = tpu.matmul %40, %38, %cst_26 {dimension_numbers = #tpu.dot_dimension_numbers<[1], [0], [0], [1], [0, 0, 1, 1], [], []>} : vector<32x32xbf16>, vector<32x256xbf16>, vector<32x256xf32> -> vector<32x256xf32>
    %42 = vector.broadcast %4 : vector<32x1xf32> to vector<32x256xf32>
    %43 = arith.addf %41, %42 : vector<32x256xf32>
    %44 = arith.truncf %43 : vector<32x256xf32> to vector<32x256xbf16>
    %cst_27 = arith.constant 2.001950e-01 : bf16
    %45 = vector.broadcast %cst_27 : bf16 to vector<32x256xbf16>
    %46 = arith.mulf %44, %45 : vector<32x256xbf16>
    %47 = arith.maximumf %44, %46 : vector<32x256xbf16>
    %cst_28 = arith.constant dense<0.000000e+00> : vector<8x256xf32>
    %48 = tpu.matmul %3, %47, %cst_28 {dimension_numbers = #tpu.dot_dimension_numbers<[1], [0], [0], [1], [0, 0, 1, 1], [], []>} : vector<8x32xbf16>, vector<32x256xbf16>, vector<8x256xf32> -> vector<8x256xf32>
    %49 = vector.broadcast %5 : vector<8x1xf32> to vector<8x256xf32>
    %50 = arith.addf %48, %49 : vector<8x256xf32>
    %c0_29 = arith.constant 0 : index
    %c0_30 = arith.constant 0 : index
    %c0_31 = arith.constant 0 : index
    %51 = vector.load %arg8[%c0_29, %c0_30, %c0_31] : memref<1x8x256xf32, #tpu.memory_space<vmem>>, vector<1x8x256xf32>
    %52 = vector.shape_cast %51 : vector<1x8x256xf32> to vector<8x256xf32>
    %53 = vector.shape_cast %50 : vector<8x256xf32> to vector<1x8x256xf32>
    tpu.vector_store %arg8[%c0_29, %c0_30, %c0_31], %53 {strides = array<i32>} : memref<1x8x256xf32, #tpu.memory_space<vmem>>, vector<1x8x256xf32>,
    return
  }
  func.func @transform_0(%arg0: i32, %arg1: i32) -> (i32, i32, i32) {
    %c0_i32 = arith.constant 0 : i32
    %c0_i32_0 = arith.constant 0 : i32
    return %arg0, %c0_i32, %arg1 : i32, i32, i32
  }
  func.func @transform_1(%arg0: i32, %arg1: i32) -> (i32, i32, i32) {
    %c0_i32 = arith.constant 0 : i32
    %c0_i32_0 = arith.constant 0 : i32
    %c0_i32_1 = arith.constant 0 : i32
    %c0_i32_2 = arith.constant 0 : i32
    return %c0_i32, %c0_i32_0, %c0_i32_1 : i32, i32, i32
  }
  func.func @transform_2(%arg0: i32, %arg1: i32) -> (i32, i32) {
    %c0_i32 = arith.constant 0 : i32
    %c0_i32_0 = arith.constant 0 : i32
    %c0_i32_1 = arith.constant 0 : i32
    return %c0_i32, %c0_i32_0 : i32, i32
  }
  func.func @transform_3(%arg0: i32, %arg1: i32) -> (i32, i32) {
    %c0_i32 = arith.constant 0 : i32
    %c0_i32_0 = arith.constant 0 : i32
    %c0_i32_1 = arith.constant 0 : i32
    return %c0_i32, %c0_i32_0 : i32, i32
  }
  func.func @transform_4(%arg0: i32, %arg1: i32) -> (i32, i32) {
    %c0_i32 = arith.constant 0 : i32
    %c0_i32_0 = arith.constant 0 : i32
    %c0_i32_1 = arith.constant 0 : i32
    return %c0_i32, %c0_i32_0 : i32, i32
  }
  func.func @transform_5(%arg0: i32, %arg1: i32) -> (i32, i32) {
    %c0_i32 = arith.constant 0 : i32
    %c0_i32_0 = arith.constant 0 : i32
    %c0_i32_1 = arith.constant 0 : i32
    return %c0_i32, %c0_i32_0 : i32, i32
  }
  func.func @transform_6(%arg0: i32, %arg1: i32) -> (i32, i32, i32) {
    %c0_i32 = arith.constant 0 : i32
    %c0_i32_0 = arith.constant 0 : i32
    return %arg0, %c0_i32, %arg1 : i32, i32, i32
  }
}

</mosaic_0001>

<bundles_post_ra>
// kernel: generator_forward.1
= control target key start
LH: loop header
LB: loop body
LE: loop exit
PB: predicated region body
PF: predicated region fallthrough
CT: control target
= control target key end

     0   :  { %s1203_s21 = smov 0   ;;  %s1205_s22 = smov 0   ;;  %s1343_s0 = inlined_call_operand.vmem [shape: bf16[2,17,256], index: 0, kind: input, shape index: {}]   ;;  %s1344_s1 = inlined_call_operand.vmem [shape: bf16[4,32,32], index: 1, kind: input, shape index: {}]   ;;  %s1345_s2 = inlined_call_operand.vmem [shape: bf16[128,17], index: 2, kind: input, shape index: {}]   ;;  %s1346_s3 = inlined_call_operand.vmem [shape: bf16[8,32], index: 3, kind: input, shape index: {}]   ;;  %s1347_s4 = inlined_call_operand.vmem [shape: f32[32,1], index: 4, kind: input, shape index: {}]   ;;  %s1348_s5 = inlined_call_operand.vmem [shape: f32[8,1], index: 5, kind: input, shape index: {}]   ;;  %s1349_s6 = inlined_call_operand.vmem [shape: f32[2,8,256], index: 6, kind: output, shape index: {}]  }
   0x1   :  { %s1207_s23 = smov 0  }
   0x2 LB: > { %s28_s24 = sadd.s32 1, %s1161_s22  ;;  %p1038_p0 = scmp.ge.s32.totalorder %s1165_s23, 1  ;;  %s1165_s23 = sphi %s1207_s23, %s16_s23   ;;  %s1161_s22 = sphi %s1205_s22, %s1351_s22   ;;  %s1157_s21 = sphi %s1203_s21, %s1350_s21  }
   0x3   : > { %p30_p1 = scmp.ge.s32.totalorder %s28_s24, 2  ;;  %p233_p2 = scmp.lt.s32.totalorder %s1165_s23, 3 }
   0x5   : > { %s1353_s24 = smov (%p30_p1, %s28_s24), 0  ;;  %p234_p3 = pnand %p1038_p0, %p233_p2 }
   0x6   : > { %p272_p4 = scmp.lt.s32.totalorder (!%p234_p3), %s1157_s21, 1 }
   0x7   : > { %237 = sbr.rel (%p234_p3) target bundleno = 1341 (0x53d), region = 44 }
   0xc   : > { %v1167_v0 = vmov 0   ;;  %s1355_s21 = smov (!%p272_p4, %s1157_s21), 1  ;;  %vm398_vm0 = vcmask 1040384   ;;  %v1127_v9 = vld [vmem:[%s1345_s2] sm:$0xff]   ;;  %vm373_vm1 = vcmask 138240   ;;  %v1128_v10 = vld [vmem:[%s1345_s2 + $0x8] sm:$0xff]  }
   0xd   : > { %439 = vmatprep.mubr.bf16.mxu0 %v1167_v0  ;;  %585 = vmatprep.mubr.bf16.mxu1 %v1167_v0  ;;  %s1094_s25 = smul.u32 24, %s1355_s21  ;;  %v400_v2 = vsel %vm398_vm0, 65535, %v1167_v0  ;;  %v1129_v11 = vld [vmem:[%s1345_s2 + $0x10] sm:$0xff]   ;;  %v1131_v12 = vld [vmem:[%s1345_s2 + $0x18] sm:$0xff]   ;;  %v1130_v33 = vld [vmem:[%s1344_s1] sm:$0xff]   ;;  %vm546_vm2 = vcmask 261120  }
   0xe   : > { %1121 = vset.pattern.permute.xlu1 %v1167_v0  ;;  %1120 = vset.pattern.permute.xlu0 %v1167_v0  ;;  %v1132_v34 = vld [vmem:[%s1344_s1 + $0x8] sm:$0xff]   ;;  %v1133_v35 = vld [vmem:[%s1345_s2 + $0x20] sm:$0xff]   ;;  %s1093_s9 = sshll.u32 %s1355_s21, 4 }
   0xf   : > { %s279_s28 = scalar_lea.vmem %s1343_s0, %s1094_s25  ;;  %v1135_v36 = vld [vmem:[%s1345_s2 + $0x28] sm:$0xff]   ;;  %s289_s12 = scalar_lea.vmem %s1349_s6, %s1093_s9 }
  0x10   : > { %v295_v1 = vld [vmem:[%s279_s28 + $0x10] sm:$0x11]  ;;  %v1124_v5 = vld [vmem:[%s279_s28 + $0x4] ss:$8 sps:$4 sm:$0xff]   ;;  %v1126_v8 = vld [vmem:[%s279_s28] ss:$8 sps:$4 sm:$0xff]  }
  0x11   : > { %v1053_v3 = vcombine.high %v295_v1, %v295_v1  ;;  %v1052_v4 = vcombine.low %v295_v1, %v295_v1 }
  0x13   : > { %v405_v6 = vand.u32 %v1053_v3, %v400_v2  ;;  %v402_v7 = vand.u32 %v1052_v4, %v400_v2 }
  0x15   : > { %419 = vmatprep.subr.bf16.mxu0 %v405_v6 }
  0x16   : > { %420 = vmatpush1.bf16.msra.mxu0 %v402_v7 }
  0x17   : > { %421 = vmatprep.subr.bf16.mxu0 %v1124_v5 }
  0x1a   : > { %422 = vmatpush1.bf16.msra.mxu0 %v1126_v8 }
  0x1d   : > { %1054 = vmatmul.mubr.msk.bf16.vlgmr.msra.gmra.mxu0 %vm373_vm1, %v1127_v9 }
  0x1e   : > { %449 = vmatprep.mubr.bf16.mxu0 %v1167_v0 }
  0x25   : > { %1055 = vmatmul.mubr.msk.bf16.gmra.mxu0 %vm373_vm1, %v1128_v10  ;;  %v1134_v10 = vld [vmem:[%s1344_s1 + $0x10] sm:$0xff]  }
  0x26   : > { %459 = vmatprep.mubr.bf16.mxu0 %v1167_v0 }
  0x2d   : > { %1056 = vmatmul.mubr.msk.bf16.gmra.mxu0 %vm373_vm1, %v1129_v11  ;;  %v1136_v11 = vld [vmem:[%s1344_s1 + $0x18] sm:$0xff]  }
  0x2e   : > { %469 = vmatprep.mubr.bf16.mxu0 %v1167_v0 }
  0x35   : > { %1057 = vmatmul.mubr.msk.bf16.gmra.mxu0 %vm373_vm1, %v1131_v12  ;;  %v1137_v12 = vld [vmem:[%s1345_s2 + $0x30] sm:$0xff]  }
  0x36   : > { %479 = vmatprep.mubr.bf16.mxu0 %v1167_v0 }
  0x3d   : > { %1058 = vmatmul.mubr.msk.bf16.gmra.mxu0 %vm373_vm1, %v1133_v35 }
  0x3e   : > { %489 = vmatprep.mubr.bf16.mxu0 %v1167_v0 }
  0x45   : > { %1059 = vmatmul.mubr.msk.bf16.gmra.mxu0 %vm373_vm1, %v1135_v36 }
  0x46   : > { %499 = vmatprep.mubr.bf16.mxu0 %v1167_v0 }
  0x4d   : > { %1060 = vmatmul.mubr.msk.bf16.gmra.mxu0 %vm373_vm1, %v1137_v12 }
  0x4e   : > { %509 = vmatprep.mubr.bf16.mxu0 %v1167_v0 }
  0xdd   : > { %v441_v13 = vpop.f32.mrf.mxu0 }
  0xdf   : > { %v443_v14 = vpop.f32.mrf.mxu0 }
  0xe1   : > { %v445_v15 = vpop.f32.mrf.mxu0 }
  0xe2   : > { %v520_v24 = vpack.c.bf16 %v445_v15, %v441_v13  ;;  %v1139_v13 = vld [vmem:[%s1345_s2 + $0x38] sm:$0xff]  }
  0xe3   : > { %v447_v16 = vpop.f32.mrf.mxu0  ;;  %1061 = vmatmul.mubr.msk.bf16.gmra.mxu0 %vm373_vm1, %v1139_v13 }
  0xe4   : > { %v521_v20 = vpack.c.bf16 %v447_v16, %v443_v14  ;;  %v524_v29 = vmul.bf16 1045249613, %v520_v24  ;;  %936 = vmatprep.mubr.bf16.mxu0 %v1167_v0 }
  0xe5   : > { %v451_v17 = vpop.f32.mrf.mxu0 }
  0xe6   : > { %v525_v26 = vmul.bf16 1045249613, %v521_v20  ;;  %v528_v32 = vmax.bf16 %v524_v29, %v520_v24 }
  0xe7   : > { %v453_v18 = vpop.f32.mrf.mxu0 }
  0xe8   : > { %v529_v31 = vmax.bf16 %v525_v26, %v521_v20 }
  0xe9   : > { %v455_v19 = vpop.f32.mrf.mxu0 }
  0xea   : > { %v522_v21 = vpack.c.bf16 %v455_v19, %v451_v17 }
  0xeb   : > { %v457_v22 = vpop.f32.mrf.mxu0 }
  0xec   : > { %v523_v23 = vpack.c.bf16 %v457_v22, %v453_v18  ;;  %v526_v25 = vmul.bf16 1045249613, %v522_v21 }
  0xed   : > { %v461_v37 = vpop.f32.mrf.mxu0 }
  0xee   : > { %v527_v27 = vmul.bf16 1045249613, %v523_v23  ;;  %v530_v30 = vmax.bf16 %v526_v25, %v522_v21 }
  0xef   : > { %v463_v38 = vpop.f32.mrf.mxu0 }
  0xf0   : > { %v531_v28 = vmax.bf16 %v527_v27, %v523_v23 }
  0xf1   : > { %v465_v39 = vpop.f32.mrf.mxu0 }
  0xf2   : > { %565 = vmatprep.subr.bf16.mxu1 %v531_v28 }
  0xf3   : > { %566 = vmatpush1.bf16.msra.mxu1 %v530_v30  ;;  %v467_v40 = vpop.f32.mrf.mxu0 }
  0xf4   : > { %567 = vmatprep.subr.bf16.mxu1 %v529_v31 }
  0xf5   : > { %v471_v42 = vpop.f32.mrf.mxu0 }
  0xf7   : > { %568 = vmatpush1.bf16.msra.mxu1 %v528_v32  ;;  %v473_v45 = vpop.f32.mrf.mxu0 }
  0xf9   : > { %v475_v48 = vpop.f32.mrf.mxu0 }
  0xfa   : > { %1064 = vmatmul.mubr.msk.bf16.vlgmr.msra.gmra.mxu1 %vm546_vm2, %v1130_v33 }
  0xfb   : > { %595 = vmatprep.mubr.bf16.mxu1 %v1167_v0  ;;  %v477_v56 = vpop.f32.mrf.mxu0 }
  0xfd   : > { %v481_v14 = vpop.f32.mrf.mxu0 }
  0xff   : > { %v483_v15 = vpop.f32.mrf.mxu0 }
 0x101   : > { %v485_v16 = vpop.f32.mrf.mxu0 }
 0x102   : > { %1065 = vmatmul.mubr.msk.bf16.gmra.mxu1 %vm546_vm2, %v1132_v34 }
 0x103   : > { %671 = vmatprep.mubr.bf16.mxu1 %v1167_v0  ;;  %v487_v17 = vpop.f32.mrf.mxu0 }
 0x105   : > { %v491_v19 = vpop.f32.mrf.mxu0 }
 0x107   : > { %v493_v22 = vpop.f32.mrf.mxu0 }
 0x109   : > { %v495_v25 = vpop.f32.mrf.mxu0 }
 0x10b   : > { %v497_v33 = vpop.f32.mrf.mxu0 }
 0x1ba   : > { %v587_v41 = vpop.f32.mrf.mxu1 }
 0x1bb   : > { %v588_v62 = vadd.f32 %v587_v41, %v461_v37 }
 0x1bc   : > { %v589_v43 = vpop.f32.mrf.mxu1 }
 0x1bd   : > { %v590_v52 = vadd.f32 %v589_v43, %v463_v38 }
 0x1be   : > { %v591_v44 = vpop.f32.mrf.mxu1 }
 0x1bf   : > { %v592_v55 = vadd.f32 %v591_v44, %v465_v39 }
 0x1c0   : > { %v593_v46 = vpop.f32.mrf.mxu1 }
 0x1c1   : > { %v594_v50 = vadd.f32 %v593_v46, %v467_v40  ;;  %v606_v1 = vpack.c.bf16 %v592_v55, %v588_v62  ;;  %v316_v55 = vld [vmem:[%s1347_s4 + $0x18] sm:$0xff] }
 0x1c2   : > { %v597_v47 = vpop.f32.mrf.mxu1 }
 0x1c3   : > { %v598_v53 = vadd.f32 %v597_v47, %v471_v42  ;;  %v607_v58 = vpack.c.bf16 %v594_v50, %v590_v52  ;;  %v610_v6 = vmul.bf16 1045249613, %v606_v1  ;;  %v1138_v50 = vld [vmem:[%s1344_s1 + $0x20] sm:$0xff]  }
 0x1c4   : > { %v599_v49 = vpop.f32.mrf.mxu1  ;;  %v313_v52 = vld [vmem:[%s1347_s4] sm:$0xff] }
 0x1c5   : > { %v600_v59 = vadd.f32 %v599_v49, %v473_v45  ;;  %v611_v3 = vmul.bf16 1045249613, %v607_v58  ;;  %v614_v9 = vmax.bf16 %v610_v6, %v606_v1  ;;  %797 = vperm.xlu1 %1121, %v313_v52  }
 0x1c6   : > { %v601_v51 = vpop.f32.mrf.mxu1 }
 0x1c7   : > { %v602_v54 = vadd.f32 %v601_v51, %v475_v48  ;;  %v615_v8 = vmax.bf16 %v611_v3, %v607_v58  ;;  %v1140_v51 = vld [vmem:[%s1344_s1 + $0x28] sm:$0xff]  }
 0x1c8   : > { %v603_v57 = vpop.f32.mrf.mxu1 }
 0x1c9   : > { %v608_v60 = vpack.c.bf16 %v602_v54, %v598_v53  ;;  %v604_v61 = vadd.f32 %v603_v57, %v477_v56  ;;  %v315_v53 = vld [vmem:[%s1347_s4 + $0x10] sm:$0xff]  ;;  %v314_v54 = vld [vmem:[%s1347_s4 + $0x8] sm:$0xff]  ;;  %v317_v56 = vld [vmem:[%s1348_s5] sm:$0xff]  ;;  %v501_v57 = vpop.f32.mrf.mxu0 }
 0x1ca   : > { %807 = vperm.xlu0 %1120, %v315_v53   ;;  %802 = vperm.xlu1 %1121, %v314_v54  }
 0x1cb   : > { %v609_v63 = vpack.c.bf16 %v604_v61, %v600_v59  ;;  %v612_v2 = vmul.bf16 1045249613, %v608_v60  ;;  %v503_v58 = vpop.f32.mrf.mxu0 }
 0x1cd   : > { %v613_v4 = vmul.bf16 1045249613, %v609_v63  ;;  %v616_v7 = vmax.bf16 %v612_v2, %v608_v60  ;;  %v505_v59 = vpop.f32.mrf.mxu0 }
 0x1ce   : > { %812 = vperm.xlu0 %1120, %v316_v55  }
 0x1cf   : > { %v617_v5 = vmax.bf16 %v613_v4, %v609_v63  ;;  %v507_v60 = vpop.f32.mrf.mxu0 }
 0x1d1   : > { %651 = vmatprep.subr.bf16.mxu1 %v617_v5  ;;  %v511_v62 = vpop.f32.mrf.mxu0 }
 0x1d2   : > { %652 = vmatpush1.bf16.msra.mxu1 %v616_v7  ;;  %898 = vperm.xlu0 %1120, %v317_v56  }
 0x1d3   : > { %653 = vmatprep.subr.bf16.mxu1 %v615_v8  ;;  %v513_v2 = vpop.f32.mrf.mxu0 }
 0x1d5   : > { %v515_v5 = vpop.f32.mrf.mxu0 }
 0x1d6   : > { %654 = vmatpush1.bf16.msra.mxu1 %v614_v9 }
 0x1d7   : > { %v517_v13 = vpop.f32.mrf.mxu0 }
 0x1d9   : > { %1072 = vmatmul.mubr.msk.bf16.vlgmr.msra.gmra.mxu1 %vm546_vm2, %v1134_v10 }
 0x1da   : > { %681 = vmatprep.mubr.bf16.mxu1 %v1167_v0 }
 0x1e1   : > { %1073 = vmatmul.mubr.msk.bf16.gmra.mxu1 %vm546_vm2, %v1136_v11 }
 0x1e2   : > { %757 = vmatprep.mubr.bf16.mxu1 %v1167_v0 }
 0x299   : > { %v673_v18 = vpop.f32.mrf.mxu1 }
 0x29a   : > { %v674_v39 = vadd.f32 %v673_v18, %v481_v14 }
 0x29b   : > { %v675_v20 = vpop.f32.mrf.mxu1 }
 0x29c   : > { %v676_v29 = vadd.f32 %v675_v20, %v483_v15 }
 0x29d   : > { %v677_v21 = vpop.f32.mrf.mxu1 }
 0x29e   : > { %v678_v32 = vadd.f32 %v677_v21, %v485_v16 }
 0x29f   : > { %v679_v23 = vpop.f32.mrf.mxu1 }
 0x2a0   : > { %v680_v27 = vadd.f32 %v679_v23, %v487_v17  ;;  %v692_v41 = vpack.c.bf16 %v678_v32, %v674_v39 }
 0x2a1   : > { %v683_v24 = vpop.f32.mrf.mxu1 }
 0x2a2   : > { %v684_v30 = vadd.f32 %v683_v24, %v491_v19  ;;  %v693_v35 = vpack.c.bf16 %v680_v27, %v676_v29  ;;  %v696_v46 = vmul.bf16 1045249613, %v692_v41 }
 0x2a3   : > { %v685_v26 = vpop.f32.mrf.mxu1 }
 0x2a4   : > { %v686_v36 = vadd.f32 %v685_v26, %v493_v22  ;;  %v697_v43 = vmul.bf16 1045249613, %v693_v35  ;;  %v700_v49 = vmax.bf16 %v696_v46, %v692_v41 }
 0x2a5   : > { %v687_v28 = vpop.f32.mrf.mxu1 }
 0x2a6   : > { %v688_v31 = vadd.f32 %v687_v28, %v495_v25  ;;  %v701_v48 = vmax.bf16 %v697_v43, %v693_v35 }
 0x2a7   : > { %v689_v34 = vpop.f32.mrf.mxu1 }
 0x2a8   : > { %v694_v37 = vpack.c.bf16 %v688_v31, %v684_v30  ;;  %v690_v38 = vadd.f32 %v689_v34, %v497_v33  ;;  %v1141_v30 = vld [vmem:[%s1344_s1 + $0x30] sm:$0xff]   ;;  %v1142_v31 = vld [vmem:[%s1344_s1 + $0x38] sm:$0xff]   ;;  %v798_v34 = vpop.permute.xlu1 %797 }
 0x2aa   : > { %v695_v40 = vpack.c.bf16 %v690_v38, %v686_v36  ;;  %v698_v42 = vmul.bf16 1045249613, %v694_v37  ;;  %v808_v36 = vpop.permute.xlu0 %807 }
 0x2ac   : > { %v699_v44 = vmul.bf16 1045249613, %v695_v40  ;;  %v702_v47 = vmax.bf16 %v698_v42, %v694_v37  ;;  %v803_v39 = vpop.permute.xlu1 %802 }
 0x2ae   : > { %v703_v45 = vmax.bf16 %v699_v44, %v695_v40  ;;  %v813_v42 = vpop.permute.xlu0 %812 }
 0x2b0   : > { %737 = vmatprep.subr.bf16.mxu1 %v703_v45 }
 0x2b1   : > { %738 = vmatpush1.bf16.msra.mxu1 %v702_v47 }
 0x2b2   : > { %739 = vmatprep.subr.bf16.mxu1 %v701_v48 }
 0x2b5   : > { %740 = vmatpush1.bf16.msra.mxu1 %v700_v49 }
 0x2b8   : > { %1080 = vmatmul.mubr.msk.bf16.vlgmr.msra.gmra.mxu1 %vm546_vm2, %v1138_v50 }
 0x2b9   : > { %767 = vmatprep.mubr.bf16.mxu1 %v1167_v0 }
 0x2c0   : > { %1081 = vmatmul.mubr.msk.bf16.gmra.mxu1 %vm546_vm2, %v1140_v51 }
 0x2c1   : > { %863 = vmatprep.mubr.bf16.mxu1 %v1167_v0 }
 0x378   : > { %v759_v61 = vpop.f32.mrf.mxu1 }
 0x379   : > { %v760_v19 = vadd.f32 %v759_v61, %v501_v57 }
 0x37a   : > { %v761_v63 = vpop.f32.mrf.mxu1 }
 0x37b   : > { %v762_v9 = vadd.f32 %v761_v63, %v503_v58  ;;  %v312_v63 = vld [vmem:[%s1346_s3] sm:$0xf] }
 0x37c   : > { %v763_v1 = vpop.f32.mrf.mxu1 }
 0x37d   : > { %v764_v12 = vadd.f32 %v763_v1, %v505_v59  ;;  %v899_v1 = vpop.permute.xlu0 %898 }
 0x37e   : > { %v765_v3 = vpop.f32.mrf.mxu1 }
 0x37f   : > { %v766_v7 = vadd.f32 %v765_v3, %v507_v60  ;;  %v778_v21 = vpack.c.bf16 %v764_v12, %v760_v19 }
 0x380   : > { %v769_v4 = vpop.f32.mrf.mxu1 }
 0x381   : > { %v770_v10 = vadd.f32 %v769_v4, %v511_v62  ;;  %v779_v15 = vpack.c.bf16 %v766_v7, %v762_v9  ;;  %v782_v26 = vmul.bf16 1045249613, %v778_v21 }
 0x382   : > { %v771_v6 = vpop.f32.mrf.mxu1 }
 0x383   : > { %v772_v16 = vadd.f32 %v771_v6, %v513_v2  ;;  %v783_v23 = vmul.bf16 1045249613, %v779_v15  ;;  %v786_v29 = vmax.bf16 %v782_v26, %v778_v21 }
 0x384   : > { %v773_v8 = vpop.f32.mrf.mxu1 }
 0x385   : > { %v774_v11 = vadd.f32 %v773_v8, %v515_v5  ;;  %v787_v28 = vmax.bf16 %v783_v23, %v779_v15 }
 0x386   : > { %v775_v14 = vpop.f32.mrf.mxu1 }
 0x387   : > { %v780_v17 = vpack.c.bf16 %v774_v11, %v770_v10  ;;  %v776_v18 = vadd.f32 %v775_v14, %v517_v13 }
 0x389   : > { %v781_v20 = vpack.c.bf16 %v776_v18, %v772_v16  ;;  %v784_v22 = vmul.bf16 1045249613, %v780_v17 }
 0x38b   : > { %v785_v24 = vmul.bf16 1045249613, %v781_v20  ;;  %v788_v27 = vmax.bf16 %v784_v22, %v780_v17 }
 0x38d   : > { %v789_v25 = vmax.bf16 %v785_v24, %v781_v20 }
 0x38f   : > { %843 = vmatprep.subr.bf16.mxu1 %v789_v25 }
 0x390   : > { %844 = vmatpush1.bf16.msra.mxu1 %v788_v27 }
 0x391   : > { %845 = vmatprep.subr.bf16.mxu1 %v787_v28 }
 0x394   : > { %846 = vmatpush1.bf16.msra.mxu1 %v786_v29 }
 0x397   : > { %1088 = vmatmul.mubr.msk.bf16.vlgmr.msra.gmra.mxu1 %vm546_vm2, %v1141_v30 }
 0x398   : > { %873 = vmatprep.mubr.bf16.mxu1 %v1167_v0 }
 0x39f   : > { %1089 = vmatmul.mubr.msk.bf16.gmra.mxu1 %vm546_vm2, %v1142_v31 }
 0x457   : > { %v865_v32 = vpop.f32.mrf.mxu1 }
 0x458   : > { %v866_v52 = vadd.f32 %v865_v32, %v798_v34 }
 0x459   : > { %v867_v33 = vpop.f32.mrf.mxu1 }
 0x45a   : > { %v868_v44 = vadd.f32 %v867_v33, %v798_v34 }
 0x45b   : > { %v869_v35 = vpop.f32.mrf.mxu1 }
 0x45c   : > { %v870_v46 = vadd.f32 %v869_v35, %v803_v39 }
 0x45d   : > { %v871_v37 = vpop.f32.mrf.mxu1 }
 0x45e   : > { %v872_v41 = vadd.f32 %v871_v37, %v803_v39  ;;  %v884_v54 = vpack.c.bf16 %v870_v46, %v866_v52 }
 0x45f   : > { %v875_v38 = vpop.f32.mrf.mxu1 }
 0x460   : > { %v876_v0 = vadd.f32 %v875_v38, %v808_v36  ;;  %v885_v48 = vpack.c.bf16 %v872_v41, %v868_v44  ;;  %v888_v59 = vmul.bf16 1045249613, %v884_v54 }
 0x461   : > { %v877_v40 = vpop.f32.mrf.mxu1 }
 0x462   : > { %v878_v49 = vadd.f32 %v877_v40, %v808_v36  ;;  %v889_v56 = vmul.bf16 1045249613, %v885_v48  ;;  %v892_v62 = vmax.bf16 %v888_v59, %v884_v54 }
 0x463   : > { %v879_v43 = vpop.f32.mrf.mxu1 }
 0x464   : > { %v880_v45 = vadd.f32 %v879_v43, %v813_v42  ;;  %v893_v61 = vmax.bf16 %v889_v56, %v885_v48 }
 0x465   : > { %v881_v47 = vpop.f32.mrf.mxu1 }
 0x466   : > { %v886_v50 = vpack.c.bf16 %v880_v45, %v876_v0  ;;  %v882_v51 = vadd.f32 %v881_v47, %v813_v42 }
 0x468   : > { %v887_v53 = vpack.c.bf16 %v882_v51, %v878_v49  ;;  %v890_v55 = vmul.bf16 1045249613, %v886_v50 }
 0x46a   : > { %v891_v57 = vmul.bf16 1045249613, %v887_v53  ;;  %v894_v60 = vmax.bf16 %v890_v55, %v886_v50 }
 0x46c   : > { %v895_v58 = vmax.bf16 %v891_v57, %v887_v53 }
 0x46e   : > { %916 = vmatprep.subr.bf16.mxu0 %v895_v58 }
 0x46f   : > { %917 = vmatpush1.bf16.msra.mxu0 %v894_v60 }
 0x470   : > { %918 = vmatprep.subr.bf16.mxu0 %v893_v61 }
 0x473   : > { %919 = vmatpush1.bf16.msra.mxu0 %v892_v62 }
 0x476   : > { %1090 = vmatmul.mubr.msk.bf16.vlgmr.msra.gmra.mxu0 %vm546_vm2, %v312_v63 }
 0x536   : > { %v938_v2 = vpop.f32.mrf.mxu0 }
 0x537   : > { %v939_v3 = vadd.f32 %v938_v2, %v899_v1 }
 0x538   : > { %v940_v4 = vpop.f32.mrf.mxu0 }
 0x539   : > { %945 = vst [vmem:[%s289_s12] sm:$0xff] %v939_v3  ;;  %v941_v5 = vadd.f32 %v940_v4, %v899_v1 }
 0x53a   : > { %v942_v6 = vpop.f32.mrf.mxu0 }
 0x53b   : > { %946 = vst [vmem:[%s289_s12 + $0x8] sm:$0xff] %v941_v5 }
 0x53c   : > { %v943_v7 = vpop.f32.mrf.mxu0 }
 0x53d PF: > { %s16_s23 = sadd.s32 1, %s1165_s23   ;;  %s1350_s21 = smov %s1161_s22 }
 0x53e   : > { %p13_p5 = scmp.ge.s32.totalorder %s16_s23, 4   ;;  %s1351_s22 = smov %s1353_s24 }
 0x540   :  { %15 = sbr.rel (!%p13_p5) target bundleno = 2 (0x2), region = 77 }

</bundles_post_ra>
